<compile_context>
chip_gen: v7x
topology: tpu7x:2x2x1
jax: 0.10.0
libtpu: 0.0.40
codegen_flags: <defaults>
</compile_context>

<pallas_src>
import jax
import jax.numpy as jnp
from jax import lax
from jax.experimental import pallas as pl
from jax.experimental.pallas import tpu as pltpu

POS_WEIGHT = 30.0      # nn.BCEWithLogitsLoss(pos_weight=torch.tensor([30]))
LANES = 128            # TPU lane width
MAX_BLOCK_ROWS = 512   # sublane rows per grid step; 512*128*4B = 256 KiB / operand tile


def _bce_with_logits_mean_kernel(nvalid_ref, x_ref, y_ref, o_ref):
    """Accumulate the pos-weighted stable BCE-with-logits sum across the grid.

    o_ref is a (1, 1) f32 block resident across all grid steps; the final
    step divides by the valid-element count to produce the mean.
    """
    i = pl.program_id(0)

    @pl.when(i == 0)
    def _():
        o_ref[...] = jnp.zeros_like(o_ref)

    x = x_ref[...].astype(jnp.float32)
    y = y_ref[...].astype(jnp.float32)

    # Stable pos-weighted BCE-with-logits (matches PyTorch's ATen kernel).
    log_weight = 1.0 + (POS_WEIGHT - 1.0) * y
    softplus_neg_x = jnp.maximum(-x, 0.0) + jnp.log1p(jnp.exp(-jnp.abs(x)))
    loss = (1.0 - y) * x + log_weight * softplus_neg_x

    # Mask out padding elements (global flat index >= n_valid).
    tm, tl = x_ref.shape
    row = lax.broadcasted_iota(jnp.int32, (tm, tl), 0)
    col = lax.broadcasted_iota(jnp.int32, (tm, tl), 1)
    flat_idx = (i * tm + row) * tl + col
    loss = jnp.where(flat_idx < nvalid_ref[0], loss, 0.0)

    partial = jnp.sum(loss, axis=1, keepdims=True)      # (tm, 1)
    partial = jnp.sum(partial, axis=0, keepdims=True)   # (1, 1)
    o_ref[...] += partial

    @pl.when(i == pl.num_programs(0) - 1)
    def _():
        o_ref[...] = o_ref[...] / nvalid_ref[0].astype(jnp.float32)


def _round_up(a, b):
    return -(-a // b) * b


@jax.jit
def mask_loss(inputs, targets):
    """MaskLoss.forward(inputs, targets) -> scalar f32 loss."""
    assert inputs.shape == targets.shape, (inputs.shape, targets.shape)
    n = inputs.size

    x = inputs.reshape(-1).astype(jnp.float32)
    y = targets.reshape(-1).astype(jnp.float32)

    # Lane-aligned 2-D layout: (rows, 128), rows padded to a multiple of the
    # row tile so every block satisfies the (8, 128) tiling constraint.
    rows = _round_up(n, LANES) // LANES
    tm = min(MAX_BLOCK_ROWS, _round_up(rows, 8))
    rows_pad = _round_up(rows, tm)
    pad = rows_pad * LANES - n

    x = jnp.pad(x, (0, pad)).reshape(rows_pad, LANES)
    y = jnp.pad(y, (0, pad)).reshape(rows_pad, LANES)
    n_valid = jnp.array([n], jnp.int32)

    grid = (rows_pad // tm,)
    out = pl.pallas_call(
        _bce_with_logits_mean_kernel,
        out_shape=jax.ShapeDtypeStruct((1, 1), jnp.float32),
        grid_spec=pltpu.PrefetchScalarGridSpec(
            num_scalar_prefetch=1,
            grid=grid,
            in_specs=[
                pl.BlockSpec((tm, LANES), lambda i, nv: (i, 0)),  # logits tile
                pl.BlockSpec((tm, LANES), lambda i, nv: (i, 0)),  # targets tile
            ],
            out_specs=pl.BlockSpec((1, 1), lambda i, nv: (0, 0)),  # resident accumulator
        ),
        compiler_params=pltpu.CompilerParams(
            dimension_semantics=("arbitrary",),  # reduction into one output block
        ),
    )(n_valid, x, y)
    return out[0, 0]


def reference_mask_loss(inputs, targets):
    """Pure-JAX reference (matches torch.nn.BCEWithLogitsLoss(pos_weight=30))."""
    x = inputs.astype(jnp.float32)
    y = targets.astype(jnp.float32)
    log_weight = 1.0 + (POS_WEIGHT - 1.0) * y
    loss = (1.0 - y) * x + log_weight * (
        jnp.maximum(-x, 0.0) + jnp.log1p(jnp.exp(-jnp.abs(x)))
    )
    return jnp.mean(loss)


if __name__ == "__main__":
    key = jax.random.PRNGKey(0)
    kx, kt = jax.random.split(key)

    # Small mask-shaped example: batch=2, channels=4, 16x16 spatial.
    inputs = jax.random.normal(kx, (2, 4, 16, 16), jnp.float32)            # logits
    targets = (jax.random.uniform(kt, (2, 4, 16, 16)) < 0.1).astype(jnp.float32)

    out = jax.block_until_ready(mask_loss(inputs, targets))
    assert out.shape == (), out.shape
    assert bool(jnp.isfinite(out))

    ref = jax.block_until_ready(reference_mask_loss(inputs, targets))
    err = abs(float(out) - float(ref))
    assert err < 1e-5 * max(1.0, abs(float(ref))), f"abs error {err} (ref {float(ref)})"

    print("KERNEL_OK")
</pallas_src>

<mosaic_0001>
module attributes {stable_mosaic.version = 11 : i64} {
  func.func @_bce_with_logits_mean_kernel(%arg0: i32, %arg1: memref<1xi32, #tpu.memory_space<smem>>, %arg2: memref<16x128xf32, #tpu.memory_space<vmem>>, %arg3: memref<16x128xf32, #tpu.memory_space<vmem>>, %arg4: memref<1x1xf32, #tpu.memory_space<vmem>>) attributes {dimension_semantics = [#tpu.dimension_semantics<arbitrary>], iteration_bounds = array<i64: 1>, scalar_prefetch = 1 : i64, scratch_operands = 0 : i64, tpu.core_type = #tpu.core_type<tc>, window_params = [{transform_indices = @transform_0, window_bounds = array<i64: 16, 128>}, {transform_indices = @transform_1, window_bounds = array<i64: 16, 128>}, {pipeline_mode = #tpu.pipeline_mode<synchronous>, transform_indices = @transform_2, window_bounds = array<i64: 1, 1>}]} {
    %c0_i32 = arith.constant 0 : i32
    %0 = arith.cmpi eq, %arg0, %c0_i32 : i32
    %1 = arith.extui %0 : i1 to i32
    %c0_i32_0 = arith.constant 0 : i32
    %2 = arith.cmpi ne, %1, %c0_i32_0 : i32
    scf.if %2 {
      %cst_19 = arith.constant 0.000000e+00 : f32
      %47 = vector.broadcast %cst_19 : f32 to vector<1x1xf32>
      %c0_20 = arith.constant 0 : index
      %c0_21 = arith.constant 0 : index
      %48 = vector.load %arg4[%c0_20, %c0_21] : memref<1x1xf32, #tpu.memory_space<vmem>>, vector<1x1xf32>
      tpu.vector_store %arg4[%c0_20, %c0_21], %47 {strides = array<i32>} : memref<1x1xf32, #tpu.memory_space<vmem>>, vector<1x1xf32>,
    } else {
    }
    %c0 = arith.constant 0 : index
    %c0_1 = arith.constant 0 : index
    %3 = vector.load %arg2[%c0, %c0_1] : memref<16x128xf32, #tpu.memory_space<vmem>>, vector<16x128xf32>
    %c0_2 = arith.constant 0 : index
    %c0_3 = arith.constant 0 : index
    %4 = vector.load %arg3[%c0_2, %c0_3] : memref<16x128xf32, #tpu.memory_space<vmem>>, vector<16x128xf32>
    %cst = arith.constant 2.900000e+01 : f32
    %5 = vector.broadcast %cst : f32 to vector<16x128xf32>
    %6 = arith.mulf %5, %4 : vector<16x128xf32>
    %cst_4 = arith.constant 1.000000e+00 : f32
    %7 = vector.broadcast %cst_4 : f32 to vector<16x128xf32>
    %8 = arith.addf %7, %6 : vector<16x128xf32>
    %cst_5 = arith.constant 0.000000e+00 : f32
    %9 = vector.broadcast %cst_5 : f32 to vector<16x128xf32>
    %10 = arith.subf %9, %3 : vector<16x128xf32>
    %cst_6 = arith.constant 0.000000e+00 : f32
    %11 = vector.broadcast %cst_6 : f32 to vector<16x128xf32>
    %12 = arith.maximumf %10, %11 : vector<16x128xf32>
    %13 = math.absf %3 : vector<16x128xf32>
    %cst_7 = arith.constant 0.000000e+00 : f32
    %14 = vector.broadcast %cst_7 : f32 to vector<16x128xf32>
    %15 = arith.subf %14, %13 : vector<16x128xf32>
    %16 = math.exp %15 : vector<16x128xf32>
    %17 = math.log1p %16 : vector<16x128xf32>
    %18 = arith.addf %12, %17 : vector<16x128xf32>
    %cst_8 = arith.constant 1.000000e+00 : f32
    %19 = vector.broadcast %cst_8 : f32 to vector<16x128xf32>
    %20 = arith.subf %19, %4 : vector<16x128xf32>
    %21 = arith.mulf %20, %3 : vector<16x128xf32>
    %22 = arith.mulf %8, %18 : vector<16x128xf32>
    %23 = arith.addf %21, %22 : vector<16x128xf32>
    %24 = tpu.iota {dimensions = array<i32: 0>} : vector<16x128xi32>
    %25 = tpu.iota {dimensions = array<i32: 1>} : vector<16x128xi32>
    %c16_i32 = arith.constant 16 : i32
    %26 = arith.muli %arg0, %c16_i32 : i32
    %27 = vector.broadcast %26 : i32 to vector<16x128xi32>
    %28 = arith.addi %27, %24 : vector<16x128xi32>
    %c128_i32 = arith.constant 128 : i32
    %29 = vector.broadcast %c128_i32 : i32 to vector<16x128xi32>
    %30 = arith.muli %28, %29 : vector<16x128xi32>
    %31 = arith.addi %30, %25 : vector<16x128xi32>
    %c0_9 = arith.constant 0 : index
    %32 = memref.load %arg1[%c0_9] : memref<1xi32, #tpu.memory_space<smem>>
    %33 = vector.broadcast %32 : i32 to vector<16x128xi32>
    %34 = arith.cmpi slt, %31, %33 : vector<16x128xi32>
    %cst_10 = arith.constant 0.000000e+00 : f32
    %35 = vector.broadcast %cst_10 : f32 to vector<16x128xf32>
    %36 = arith.select %34, %23, %35 : vector<16x128xi1>, vector<16x128xf32>
    %cst_11 = arith.constant dense<0.000000e+00> : vector<16xf32>
    %37 = vector.multi_reduction <add>, %36, %cst_11 [1] : vector<16x128xf32> to vector<16xf32>
    %38 = vector.shape_cast %37 : vector<16xf32> to vector<16x1xf32>
    %cst_12 = arith.constant dense<0.000000e+00> : vector<1xf32>
    %39 = vector.multi_reduction <add>, %38, %cst_12 [0] : vector<16x1xf32> to vector<1xf32>
    %40 = vector.shape_cast %39 : vector<1xf32> to vector<1x1xf32>
    %c0_13 = arith.constant 0 : index
    %c0_14 = arith.constant 0 : index
    %41 = vector.load %arg4[%c0_13, %c0_14] : memref<1x1xf32, #tpu.memory_space<vmem>>, vector<1x1xf32>
    %42 = arith.addf %41, %40 : vector<1x1xf32>
    %c0_15 = arith.constant 0 : index
    %c0_16 = arith.constant 0 : index
    %43 = vector.load %arg4[%c0_15, %c0_16] : memref<1x1xf32, #tpu.memory_space<vmem>>, vector<1x1xf32>
    tpu.vector_store %arg4[%c0_15, %c0_16], %42 {strides = array<i32>} : memref<1x1xf32, #tpu.memory_space<vmem>>, vector<1x1xf32>,
    %c0_i32_17 = arith.constant 0 : i32
    %44 = arith.cmpi eq, %arg0, %c0_i32_17 : i32
    %45 = arith.extui %44 : i1 to i32
    %c0_i32_18 = arith.constant 0 : i32
    %46 = arith.cmpi ne, %45, %c0_i32_18 : i32
    scf.if %46 {
      %c0_19 = arith.constant 0 : index
      %c0_20 = arith.constant 0 : index
      %47 = vector.load %arg4[%c0_19, %c0_20] : memref<1x1xf32, #tpu.memory_space<vmem>>, vector<1x1xf32>
      %c0_21 = arith.constant 0 : index
      %48 = memref.load %arg1[%c0_21] : memref<1xi32, #tpu.memory_space<smem>>
      %49 = arith.sitofp %48 : i32 to f32
      %50 = vector.broadcast %49 : f32 to vector<1x1xf32>
      %51 = arith.divf %47, %50 : vector<1x1xf32>
      %c0_22 = arith.constant 0 : index
      %c0_23 = arith.constant 0 : index
      %52 = vector.load %arg4[%c0_22, %c0_23] : memref<1x1xf32, #tpu.memory_space<vmem>>, vector<1x1xf32>
      tpu.vector_store %arg4[%c0_22, %c0_23], %51 {strides = array<i32>} : memref<1x1xf32, #tpu.memory_space<vmem>>, vector<1x1xf32>,
    } else {
    }
    return
  }
  func.func @transform_0(%arg0: i32, %arg1: memref<1xi32, #tpu.memory_space<smem>>) -> (i32, i32) {
    %c0_i32 = arith.constant 0 : i32
    %c0_i32_0 = arith.constant 0 : i32
    return %arg0, %c0_i32 : i32, i32
  }
  func.func @transform_1(%arg0: i32, %arg1: memref<1xi32, #tpu.memory_space<smem>>) -> (i32, i32) {
    %c0_i32 = arith.constant 0 : i32
    %c0_i32_0 = arith.constant 0 : i32
    return %arg0, %c0_i32 : i32, i32
  }
  func.func @transform_2(%arg0: i32, %arg1: memref<1xi32, #tpu.memory_space<smem>>) -> (i32, i32) {
    %c0_i32 = arith.constant 0 : i32
    %c0_i32_0 = arith.constant 0 : i32
    %c0_i32_1 = arith.constant 0 : i32
    return %c0_i32, %c0_i32_0 : i32, i32
  }
}

</mosaic_0001>

<bundles_post_ra>
// kernel: mask_loss.1
= control target key start
LH: loop header
LB: loop body
LE: loop exit
PB: predicated region body
PF: predicated region fallthrough
CT: control target
= control target key end

     0   :  { %s217_s0 = inlined_call_operand.<no memory space> [shape: s32[1], index: 0, kind: input, shape index: {}]   ;;  %s218_s1 = inlined_call_operand.vmem [shape: f32[16,128], index: 1, kind: input, shape index: {}]   ;;  %s219_s2 = inlined_call_operand.vmem [shape: f32[16,128], index: 2, kind: input, shape index: {}]   ;;  %s220_s3 = inlined_call_operand.hbm [shape: f32[1,1], index: 3, kind: output, shape index: {}]  }
   0x1   :  { %v20_v0 = vld [vmem:[%s218_s1] sm:$0xff]  ;;  %v21_v2 = vld [vmem:[%s218_s1 + $0x8] sm:$0xff] }
   0x2   :  { %v32_v1 = vand.u32 2147483647, %v20_v0 }
   0x3   :  { %9 = vsyncpa [#allocation5], 0  ;;  %v33_v4 = vand.u32 2147483647, %v21_v2  ;;  %v68_v12 = vlaneseq  ;;  %v22_v15 = vld [vmem:[%s219_s2] sm:$0xff]  ;;  %v28_v18 = vsub.f32 0.0, %v20_v0  ;;  %v82_v44 = vstv %s217_s0  ;;  %s107_s22 = scvt.s32.f32 %s217_s0 }
   0x4   :  { %v34_v3 = vsub.f32 0.0, %v32_v1  ;;  %v24_v20 = vmul.f32 29.0, %v22_v15  ;;  %v23_v21 = vld [vmem:[%s219_s2 + $0x8] sm:$0xff]  ;;  %v29_v22 = vsub.f32 0.0, %v21_v2  ;;  %v60_v31 = vsub.f32 1.0, %v22_v15  ;;  %s163_s23 = smov [#allocation4]  }
   0x5   :  { %v35_v6 = vsub.f32 0.0, %v33_v4  ;;  %v69_v17 = vshrl.u32 %v68_v12, 7  ;;  %v72_v26 = vand.u32 127, %v68_v12  ;;  %v30_v30 = vmax.f32 %v28_v18, 0.0  ;;  %s118_s24 = sshll.u32 %s163_s23, 4  ;;  %s119_s24 = int_to_ptr.vmem [resolvable:$true] %s118_s24 }
   0x6   :  { %v36_v5 = vmul.f32 1.442695, %v34_v3  ;;  %v25_v33 = vmul.f32 29.0, %v23_v21  ;;  %v26_v34 = vadd.f32 1.0, %v24_v20  ;;  %v31_v35 = vmax.f32 %v29_v22, 0.0  ;;  %s138_s25 = scalar_lea.vmem %s119_s24, 16  ;;  %p143_p1 = scmp.lt.s32.totalorder %s119_s24, %s119_s24 }
   0x7   :  { %v38_v7 = vmul.f32 1.442695, %v35_v6  ;;  %v70_v24 = vadd.s32 8, %v69_v17  ;;  %v77_v27 = vmul.u32 128, %v69_v17  ;;  %v61_v41 = vsub.f32 1.0, %v23_v21  ;;  %p139_p0 = scmp.ne.s32.totalorder %s119_s24, %s138_s25  ;;  %s142_s0 = scalar_lea.vmem %s119_s24, 32 }
   0x8   :  { %128 = vpow2.f32 %v36_v5  ;;  %v62_v43 = vmul.f32 %v60_v31, %v20_v0  ;;  %v27_v46 = vadd.f32 1.0, %v25_v33  ;;  %vm18_vm4 = vcmask 0   ;;  %p144_p2 = scmp.lt.s32.totalorder %s142_s0, %s138_s25 }
   0x9   :  { %130 = vpow2.f32 %v38_v7  ;;  %v78_v37 = vmul.u32 128, %v70_v24  ;;  %v79_v40 = vadd.s32 %v77_v27, %v72_v26  ;;  %v63_v51 = vmul.f32 %v61_v41, %v21_v2 }
   0xa   :  { %v162_v57 = vmov 0.0   ;;  %v108_v1 = vstv %s107_s22  ;;  %p145_p3 = por %p144_p2, %p143_p1 }
   0xb   :  { %v80_v49 = vadd.s32 %v78_v37, %v72_v26  ;;  %vm83_vm2 = vcmp.lt.s32.totalorder %v79_v40, %v82_v44  ;;  %19 = vst.msk [vmem:[#allocation4] sm:$0x1] %vm18_vm4, %v162_v57 }
   0xc   :  { %p146_p4 = pnand %p145_p3, %p139_p0 }
   0xd   :  { %vm84_vm3 = vcmp.lt.s32.totalorder %v80_v49, %v82_v44 }
  0x12   :  { %v129_v8 = vpop.eup %128  ;;  %v98_v3 = vld [vmem:[#allocation4] sm:$0x1] }
  0x13   :  { %v40_v9 = vadd.f32 1.0, %v129_v8  ;;  %v131_v10 = vpop.eup %130  ;;  %v43_v11 = vmul.f32 -0.5, %v129_v8  ;;  %v46_v19 = vand.u32 2147483647, %v129_v8 }
  0x14   :  { %v49_v13 = vadd.f32 1.0, %v131_v10  ;;  %v52_v14 = vmul.f32 -0.5, %v131_v10  ;;  %v55_v28 = vand.u32 2147483647, %v131_v10 }
  0x15   :  { %132 = vlog2.f32 %v40_v9  ;;  %v44_v16 = vadd.f32 1.0, %v43_v11  ;;  %vm47_vm0 = vcmp.lt.f32.partialorder %v46_v19, 0.0004427343 }
  0x16   :  { %134 = vlog2.f32 %v49_v13  ;;  %v53_v23 = vadd.f32 1.0, %v52_v14  ;;  %vm56_vm1 = vcmp.lt.f32.partialorder %v55_v28, 0.0004427343 }
  0x17   :  { %v45_v25 = vmul.f32 %v129_v8, %v44_v16  ;;  %136 = vrcp.f32 %v108_v1 }
  0x18   :  { %v54_v36 = vmul.f32 %v131_v10, %v53_v23 }
  0x1f   :  { %v133_v29 = vpop.eup %132 }
  0x20   :  { %v42_v32 = vmul.f32 0.6931472, %v133_v29  ;;  %v135_v38 = vpop.eup %134 }
  0x21   :  { %v51_v45 = vmul.f32 0.6931472, %v135_v38  ;;  %v137_v6 = vpop.eup %136 }
  0x22   :  { %v48_v39 = vsel %vm47_vm0, %v45_v25, %v42_v32 }
  0x23   :  { %v58_v42 = vadd.f32 %v48_v39, %v30_v30  ;;  %v57_v48 = vsel %vm56_vm1, %v54_v36, %v51_v45 }
  0x24   :  { %v59_v50 = vadd.f32 %v57_v48, %v31_v35 }
  0x25   :  { %v64_v47 = vmul.f32 %v58_v42, %v26_v34 }
  0x26   :  { %v65_v53 = vmul.f32 %v59_v50, %v27_v46 }
  0x27   :  { %v66_v52 = vadd.f32 %v64_v47, %v62_v43 }
  0x28   :  { %v67_v55 = vadd.f32 %v65_v53, %v63_v51 }
  0x29   :  { %v85_v54 = vsel %vm83_vm2, %v66_v52, 0.0 }
  0x2a   :  { %87 = vadd.xlane.f32.xlu0 %v85_v54  ;;  %v86_v56 = vsel %vm84_vm3, %v67_v55, 0.0 }
  0x2e   :  { %89 = vadd.xlane.f32.xlu0 %v86_v56 }
  0xb7   :  { %v88_v58 = vpop.xlane.xlu0 %87 }
  0xbb   :  { %v90_v59 = vpop.xlane.xlu0 %89 }
  0xbc   :  { %v91_v60 = vadd.f32 %v90_v59, %v88_v58 }
  0xbe   :  { %v92_v61 = vrot.slane %v91_v60, 4 }
  0xc0   :  { %v93_v62 = vadd.f32 %v92_v61, %v91_v60 }
  0xc2   :  { %v94_v63 = vrot.slane %v93_v62, 2 }
  0xc4   :  { %v95_v0 = vadd.f32 %v94_v63, %v93_v62 }
  0xc6   :  { %v96_v2 = vrot.slane %v95_v0, 1 }
  0xc8   :  { %v97_v4 = vadd.f32 %v96_v2, %v95_v0 }
  0xca   :  { %v99_v5 = vadd.f32 %v98_v3, %v97_v4 }
  0xcc   :  { %101 = vst.msk [vmem:[#allocation4] sm:$0x1] %vm18_vm4, %v99_v5 }
  0xd3   :  { %v105_v7 = vld [vmem:[#allocation4] sm:$0x1] }
  0xd4   :  { %v110_v8 = vmul.f32 %v137_v6, %v105_v7 }
  0xd6   :  { %111 = vst.msk [vmem:[#allocation4] sm:$0x1] %vm18_vm4, %v110_v8 }
  0xd7   :  { %149 = shalt.err (!%p146_p4)
}
  0xd8   :  { %s150_s28 = scalar_lea.hbm %s220_s3, 16 }
  0xd9   :  { %p151_p5 = scmp.ne.s32.totalorder %s220_s3, %s150_s28  ;;  %p154_p6 = scmp.lt.u32.totalorder %s150_s28, %s220_s3 }
  0xdb   :  { %p156_p7 = pnand %p154_p6, %p151_p5 }
  0xdd   :  { %159 = shalt.err (!%p156_p7)
}
  0xde   :  { %121 = dma.vmem_to_hbm [thread:$0]  %s119_s24, 16, %s220_s3, [#allocation5]  }
  0xdf   :  { %160 = dma.done.wait [#allocation5], 16  }
  0xe0   :  { %161 = vsyncadd [#allocation5], 4294967280 }
  0xe1   :  { %125 = vsyncpa [#allocation5], 1 }

</bundles_post_ra>
